<compile_context>
chip_gen: v7x
topology: tpu7x:2x2x1
jax: 0.10.0
libtpu: 0.0.40
codegen_flags: <defaults>
</compile_context>

<pallas_src>
import functools
from typing import NamedTuple

import jax
import jax.numpy as jnp
from jax.experimental import pallas as pl
from jax.experimental.pallas import tpu as pltpu


def _round_up(x: int, m: int) -> int:
    return ((x + m - 1) // m) * m


def _cdiv(a: int, b: int) -> int:
    return (a + b - 1) // b


# --------------------------------------------------------------------------
# Kernels
# --------------------------------------------------------------------------

def _wide_mlp_kernel_inplace(x_ref, w1_ref, b1_ref, w2_ref, b2_ref, o_ref):
    """f32-output variant: accumulate the expand-dim reduction directly into
    the resident output block (no scratch, b2 is the k==0 initializer)."""
    k = pl.program_id(1)

    @pl.when(k == 0)
    def _init():
        o_ref[...] = jnp.broadcast_to(b2_ref[...], o_ref.shape)

    # Layer 1 on this expand_dim slice: h = relu(x @ w1[:, k_tile] + b1[k_tile])
    h = jnp.dot(x_ref[...], w1_ref[...], preferred_element_type=jnp.float32)
    h = jnp.maximum(h + b1_ref[...], 0.0)

    # Layer 2 partial sum over the expand_dim reduction.
    o_ref[...] += jnp.dot(h.astype(w2_ref.dtype), w2_ref[...],
                          preferred_element_type=jnp.float32)


def _wide_mlp_kernel_scratch(x_ref, w1_ref, b1_ref, w2_ref, b2_ref, o_ref,
                             acc_ref):
    """Generic-output variant: f32 accumulator scratch, cast at finalize."""
    k = pl.program_id(1)

    @pl.when(k == 0)
    def _init():
        acc_ref[...] = jnp.broadcast_to(b2_ref[...], acc_ref.shape)

    h = jnp.dot(x_ref[...], w1_ref[...], preferred_element_type=jnp.float32)
    h = jnp.maximum(h + b1_ref[...], 0.0)
    acc_ref[...] += jnp.dot(h.astype(w2_ref.dtype), w2_ref[...],
                            preferred_element_type=jnp.float32)

    @pl.when(k == pl.num_programs(1) - 1)
    def _finalize():
        o_ref[...] = acc_ref[...].astype(o_ref.dtype)


# --------------------------------------------------------------------------
# Device plan & one-time parameter preparation
# --------------------------------------------------------------------------

class _Plan(NamedTuple):
    tm_target: int        # batch tile target (roofline-crossing)
    tk_target: int        # expand_dim reduction tile target
    vmem_budget: int      # 0.8 * device VMEM capacity
    min_batch_tiles: int  # 2 on multi-TensorCore parts (v7x)


class _Config(NamedTuple):
    input_dim: int
    expand_dim: int
    output_dim: int
    k1p: int
    k2p: int
    np_: int
    tk: int
    tm_target: int
    vmem_budget: int
    min_batch_tiles: int
    compute_dtype: object


def _device_plan() -> _Plan:
    vmem_cap = 64 << 20          # conservative default (v7x per-TC VMEM)
    tm_target, tk_target = 512, 512
    min_batch_tiles = 1
    try:
        info = pltpu.get_tpu_info()
        vmem_cap = int(getattr(info, "vmem_capacity_bytes", vmem_cap))
        name = str(getattr(info, "chip_version",
                           getattr(info, "version", ""))).lower()
        if "7" in name:            # v7x: ~310 flop/byte roofline, 64 MiB, 2 TC
            tm_target, tk_target, min_batch_tiles = 448, 512, 2
        elif "6" in name:          # v6e: ~700 flop/byte roofline, 128 MiB
            tm_target, tk_target = 768, 512
        elif "5" in name:          # v5e: ~240 flop/byte roofline, 128 MiB
            tm_target, tk_target = 256, 1024
    except Exception:
        pass
    return _Plan(tm_target, tk_target, int(0.8 * vmem_cap), min_batch_tiles)


def prepare_wide_mlp_params(w1, b1, w2, b2, *, compute_dtype=jnp.bfloat16,
                            plan: _Plan | None = None):
    """One-time weight prep (cast to MXU dtype + zero-pad to tile shapes).

    w1: (input_dim, expand_dim), w2: (expand_dim, output_dim) -- already the
    "x @ w" layout of the nn.Linear weights.  Doing this once removes the
    per-call weight cast/pad HBM traffic flagged in the performance review.
    """
    plan = plan or _device_plan()
    input_dim, expand_dim = w1.shape
    output_dim = w2.shape[1]

    k1p = _round_up(input_dim, 128)                 # layer-1 contraction (lanes)
    np_ = _round_up(output_dim, 128)                # lane-dense output stores
    tk = min(plan.tk_target, _round_up(expand_dim, 128))
    k2p = _round_up(expand_dim, tk)                 # expand dim: multiple of tk

    w1p = jnp.pad(jnp.asarray(w1, compute_dtype),
                  ((0, k1p - input_dim), (0, k2p - expand_dim)))
    b1p = jnp.pad(jnp.asarray(b1, jnp.float32).reshape(1, -1),
                  ((0, 0), (0, k2p - expand_dim)))
    w2p = jnp.pad(jnp.asarray(w2, compute_dtype),
                  ((0, k2p - expand_dim), (0, np_ - output_dim)))
    b2p = jnp.pad(jnp.asarray(b2, jnp.float32).reshape(1, -1),
                  ((0, 0), (0, np_ - output_dim)))

    cfg = _Config(input_dim, expand_dim, output_dim, k1p, k2p, np_, tk,
                  plan.tm_target, plan.vmem_budget, plan.min_batch_tiles,
                  compute_dtype)
    return (w1p, b1p, w2p, b2p), cfg


# --------------------------------------------------------------------------
# Forward
# --------------------------------------------------------------------------

def _vmem_bytes(tm, tk, k1p, np_, in_item, out_item, w_bufs, use_scratch):
    b = 2 * tm * k1p * in_item              # x tile (double buffered)
    b += w_bufs * k1p * tk * in_item        # w1 column blocks
    b += w_bufs * tk * np_ * in_item        # w2 row blocks
    b += 2 * (tk + np_) * 4                 # bias slices
    b += 2 * tm * np_ * out_item            # output tile
    if use_scratch:
        b += tm * np_ * 4                   # f32 accumulator scratch
    b += tm * max(tk, np_) * 4              # in-kernel f32 `h` temporary
    return b


def _shrink_tk(tk: int) -> int:
    """Largest multiple of 128 that strictly divides tk (fallback 128)."""
    t = tk - 128
    while t >= 128:
        if tk % t == 0:
            return t
        t -= 128
    return 128


def wide_mlp_out_fwd(x, w1p, b1p, w2p, b2p, *, cfg: _Config):
    """Fused (Linear -> ReLU -> Linear). Returns y of shape (B, output_dim)."""
    B, input_dim = x.shape
    assert input_dim == cfg.input_dim
    k1p, k2p, np_ = cfg.k1p, cfg.k2p, cfg.np_
    tk = cfg.tk
    in_item = jnp.dtype(cfg.compute_dtype).itemsize

    out_dtype = jnp.float32 if x.dtype == jnp.float32 else x.dtype
    out_item = jnp.dtype(out_dtype).itemsize
    use_scratch = out_dtype != jnp.float32

    # ---- batch tile plan: never pad batch up to a full tm multiple; on
    #      multi-TC parts ensure >= 2 batch tiles so both cores get work.
    mp0 = _round_up(B, 8)
    n_bt = max(1, _cdiv(mp0, cfg.tm_target))
    if mp0 >= 16:
        n_bt = max(n_bt, cfg.min_batch_tiles)
    tm = _round_up(_cdiv(mp0, n_bt), 8)
    n_bt = _cdiv(mp0, tm)
    mp = n_bt * tm

    # ---- shrink tiles until the plan fits the device's VMEM budget.
    def _w_bufs(tm_, tk_):
        # Deep-buffer streamed weights only in the HBM-bound small-tm regime
        # and only when there are enough reduction steps to benefit.
        return 3 if (tm_ < 256 and (k2p // tk_) >= 3) else 2

    while _vmem_bytes(tm, tk, k1p, np_, in_item, out_item,
                      _w_bufs(tm, tk), use_scratch) > cfg.vmem_budget:
        if tk > 128:
            tk = _shrink_tk(tk)           # still a mult. of 128 dividing k2p
        elif tm > 8:
            tm = _round_up(tm // 2, 8)
            n_bt = _cdiv(mp0, tm)
            mp = n_bt * tm
        else:
            break
    num_k = k2p // tk
    w_bufs = _w_bufs(tm, tk)

    # ---- per-call input prep: only x is cast/padded here.
    xp = jnp.pad(x.astype(cfg.compute_dtype),
                 ((0, mp - B), (0, k1p - input_dim)))

    grid = (mp // tm, num_k)

    def _wspec(shape, index_map):
        if w_bufs > 2:
            try:
                return pl.BlockSpec(shape, index_map,
                                    pipeline_mode=pl.Buffered(w_bufs))
            except TypeError:             # signature without pipeline_mode
                pass
        return pl.BlockSpec(shape, index_map)

    in_specs = [
        pl.BlockSpec((tm, k1p), lambda i, k: (i, 0)),   # x batch tile
        _wspec((k1p, tk), lambda i, k: (0, k)),         # w1 column block
        pl.BlockSpec((1, tk), lambda i, k: (0, k)),     # b1 slice
        _wspec((tk, np_), lambda i, k: (k, 0)),         # w2 row block
        pl.BlockSpec((1, np_), lambda i, k: (0, 0)),    # b2
    ]
    out_spec = pl.BlockSpec((tm, np_), lambda i, k: (i, 0))

    # ---- cost hint & VMEM budget (accurate for this tile plan).
    flops = 2 * mp * k2p * (k1p + np_)
    bytes_accessed = (
        mp * k1p * in_item                                  # x once
        + (mp // tm) * (k1p * k2p + k2p * np_) * in_item    # weights / batch tile
        + (k2p + np_) * 4                                   # biases
        + mp * np_ * out_item                               # output
    )
    cost = pl.CostEstimate(flops=flops, transcendentals=0,
                           bytes_accessed=bytes_accessed)

    vmem_needed = _vmem_bytes(tm, tk, k1p, np_, in_item, out_item,
                              w_bufs, use_scratch)
    vmem_limit = int(min(cfg.vmem_budget,
                         max(vmem_needed + (4 << 20), 16 << 20)))

    kernel = _wide_mlp_kernel_scratch if use_scratch else _wide_mlp_kernel_inplace
    scratch = [pltpu.VMEM((tm, np_), jnp.float32)] if use_scratch else []

    out_padded = pl.pallas_call(
        kernel,
        out_shape=jax.ShapeDtypeStruct((mp, np_), out_dtype),
        grid=grid,
        in_specs=in_specs,
        out_specs=out_spec,
        scratch_shapes=scratch,
        compiler_params=pltpu.CompilerParams(
            dimension_semantics=("parallel", "arbitrary"),
            vmem_limit_bytes=vmem_limit,
        ),
        cost_estimate=cost,
    )(xp, w1p, b1p, w2p, b2p)

    return out_padded[:B, :cfg.output_dim]       # strip batch/output padding


def wide_mlp_out(x, params, cfg):
    """Matches WideMLPOut.forward exactly: list of output_dim (B,) columns.
    Perf-critical callers should use wide_mlp_out_fwd and keep the single
    contiguous (B, output_dim) array; the split below is one slice pass."""
    y = wide_mlp_out_fwd(x, *params, cfg=cfg)
    yT = y.T
    return [yT[j] for j in range(cfg.output_dim)]


# NOTE: folding b1 into a padded K row of w1 (ones column appended to x) would
# remove the per-step (tm, tk) VPU bias add, but that VALU work is hidden under
# the MXU here, so it is intentionally not done.


# --------------------------------------------------------------------------
# Demo / self-check
# --------------------------------------------------------------------------

def _init_linear(key, in_features, out_features, dtype=jnp.float32):
    """nn.Linear-style uniform(-1/sqrt(in), 1/sqrt(in)) init; weight returned
    transposed as (in_features, out_features)."""
    kw, kb = jax.random.split(key)
    bound = 1.0 / float(in_features) ** 0.5
    w = jax.random.uniform(kw, (in_features, out_features), dtype,
                           minval=-bound, maxval=bound)
    b = jax.random.uniform(kb, (out_features,), dtype,
                           minval=-bound, maxval=bound)
    return w, b


if __name__ == "__main__":
    # Small shapes consistent with the module.
    batch, input_dim, expand_dim, output_dim = 8, 32, 64, 16

    key = jax.random.PRNGKey(0)
    kx, k1, k2 = jax.random.split(key, 3)

    x = jax.random.normal(kx, (batch, input_dim), jnp.float32)
    w1, b1 = _init_linear(k1, input_dim, expand_dim)
    w2, b2 = _init_linear(k2, expand_dim, output_dim)

    # One-time parameter prep (cast + pad hoisted out of the per-call path).
    params, cfg = prepare_wide_mlp_params(w1, b1, w2, b2)

    fwd = jax.jit(functools.partial(wide_mlp_out_fwd, cfg=cfg))
    y = jax.block_until_ready(fwd(x, *params))          # (B, output_dim)
    outs = [y[:, j] for j in range(output_dim)]         # module's list view

    # Reference in plain JAX, modelling the kernel's bf16-operand / f32-accum
    # numerics so the check stays tight.
    hi = jax.lax.Precision.HIGHEST
    xb = x.astype(jnp.bfloat16).astype(jnp.float32)
    w1b = w1.astype(jnp.bfloat16).astype(jnp.float32)
    w2b = w2.astype(jnp.bfloat16).astype(jnp.float32)
    h_ref = jnp.maximum(jnp.dot(xb, w1b, precision=hi) + b1[None, :], 0.0)
    h_ref = h_ref.astype(jnp.bfloat16).astype(jnp.float32)
    y_ref = jnp.dot(h_ref, w2b, precision=hi) + b2[None, :]

    assert len(outs) == output_dim
    for i, o in enumerate(outs):
        assert o.shape == (batch,), o.shape
        assert o.dtype == jnp.float32, o.dtype
        assert jnp.allclose(o, y_ref[:, i], atol=1e-2, rtol=1e-2), (
            i, float(jnp.max(jnp.abs(o - y_ref[:, i]))))

    print("KERNEL_OK")
</pallas_src>

<mosaic_0001>
module attributes {stable_mosaic.version = 11 : i64} {
  func.func @_wide_mlp_kernel_inplace(%arg0: i32, %arg1: i32, %arg2: memref<8x128xbf16, #tpu.memory_space<vmem>>, %arg3: memref<128x128xbf16, #tpu.memory_space<vmem>>, %arg4: memref<1x128xf32, #tpu.memory_space<vmem>>, %arg5: memref<128x128xbf16, #tpu.memory_space<vmem>>, %arg6: memref<1x128xf32, #tpu.memory_space<vmem>>, %arg7: memref<8x128xf32, #tpu.memory_space<vmem>>) attributes {dimension_semantics = [#tpu.dimension_semantics<parallel>, #tpu.dimension_semantics<arbitrary>], iteration_bounds = array<i64: 1, 1>, scalar_prefetch = 0 : i64, scratch_operands = 0 : i64, tpu.core_type = #tpu.core_type<tc>, window_params = [{transform_indices = @transform_0, window_bounds = array<i64: 8, 128>}, {transform_indices = @transform_1, window_bounds = array<i64: 128, 128>}, {transform_indices = @transform_2, window_bounds = array<i64: 1, 128>}, {transform_indices = @transform_3, window_bounds = array<i64: 128, 128>}, {pipeline_mode = #tpu.pipeline_mode<synchronous>, transform_indices = @transform_4, window_bounds = array<i64: 1, 128>}, {transform_indices = @transform_5, window_bounds = array<i64: 8, 128>}]} {
    %c0_i32 = arith.constant 0 : i32
    %0 = arith.cmpi eq, %arg1, %c0_i32 : i32
    %1 = arith.extui %0 : i1 to i32
    %c0_i32_0 = arith.constant 0 : i32
    %2 = arith.cmpi ne, %1, %c0_i32_0 : i32
    scf.if %2 {
      %c0_14 = arith.constant 0 : index
      %c0_15 = arith.constant 0 : index
      %17 = vector.load %arg6[%c0_14, %c0_15] : memref<1x128xf32, #tpu.memory_space<vmem>>, vector<1x128xf32>
      %18 = vector.shape_cast %17 : vector<1x128xf32> to vector<1x128xf32>
      %19 = vector.broadcast %18 : vector<1x128xf32> to vector<8x128xf32>
      %c0_16 = arith.constant 0 : index
      %c0_17 = arith.constant 0 : index
      %20 = vector.load %arg7[%c0_16, %c0_17] : memref<8x128xf32, #tpu.memory_space<vmem>>, vector<8x128xf32>
      tpu.vector_store %arg7[%c0_16, %c0_17], %19 {strides = array<i32>} : memref<8x128xf32, #tpu.memory_space<vmem>>, vector<8x128xf32>,
    } else {
    }
    %c0 = arith.constant 0 : index
    %c0_1 = arith.constant 0 : index
    %3 = vector.load %arg2[%c0, %c0_1] : memref<8x128xbf16, #tpu.memory_space<vmem>>, vector<8x128xbf16>
    %c0_2 = arith.constant 0 : index
    %c0_3 = arith.constant 0 : index
    %4 = vector.load %arg3[%c0_2, %c0_3] : memref<128x128xbf16, #tpu.memory_space<vmem>>, vector<128x128xbf16>
    %cst = arith.constant dense<0.000000e+00> : vector<8x128xf32>
    %5 = tpu.matmul %3, %4, %cst {dimension_numbers = #tpu.dot_dimension_numbers<[1], [0], [0], [1], [0, 0, 1, 1], [], []>} : vector<8x128xbf16>, vector<128x128xbf16>, vector<8x128xf32> -> vector<8x128xf32>
    %c0_4 = arith.constant 0 : index
    %c0_5 = arith.constant 0 : index
    %6 = vector.load %arg4[%c0_4, %c0_5] : memref<1x128xf32, #tpu.memory_space<vmem>>, vector<1x128xf32>
    %7 = vector.broadcast %6 : vector<1x128xf32> to vector<8x128xf32>
    %8 = arith.addf %5, %7 : vector<8x128xf32>
    %cst_6 = arith.constant 0.000000e+00 : f32
    %9 = vector.broadcast %cst_6 : f32 to vector<8x128xf32>
    %10 = arith.maximumf %8, %9 : vector<8x128xf32>
    %c0_7 = arith.constant 0 : index
    %c0_8 = arith.constant 0 : index
    %11 = vector.load %arg7[%c0_7, %c0_8] : memref<8x128xf32, #tpu.memory_space<vmem>>, vector<8x128xf32>
    %12 = arith.truncf %10 : vector<8x128xf32> to vector<8x128xbf16>
    %c0_9 = arith.constant 0 : index
    %c0_10 = arith.constant 0 : index
    %13 = vector.load %arg5[%c0_9, %c0_10] : memref<128x128xbf16, #tpu.memory_space<vmem>>, vector<128x128xbf16>
    %cst_11 = arith.constant dense<0.000000e+00> : vector<8x128xf32>
    %14 = tpu.matmul %12, %13, %cst_11 {dimension_numbers = #tpu.dot_dimension_numbers<[1], [0], [0], [1], [0, 0, 1, 1], [], []>} : vector<8x128xbf16>, vector<128x128xbf16>, vector<8x128xf32> -> vector<8x128xf32>
    %15 = arith.addf %11, %14 : vector<8x128xf32>
    %c0_12 = arith.constant 0 : index
    %c0_13 = arith.constant 0 : index
    %16 = vector.load %arg7[%c0_12, %c0_13] : memref<8x128xf32, #tpu.memory_space<vmem>>, vector<8x128xf32>
    tpu.vector_store %arg7[%c0_12, %c0_13], %15 {strides = array<i32>} : memref<8x128xf32, #tpu.memory_space<vmem>>, vector<8x128xf32>,
    return
  }
  func.func @transform_0(%arg0: i32, %arg1: i32) -> (i32, i32) {
    %c0_i32 = arith.constant 0 : i32
    %c0_i32_0 = arith.constant 0 : i32
    return %arg0, %c0_i32 : i32, i32
  }
  func.func @transform_1(%arg0: i32, %arg1: i32) -> (i32, i32) {
    %c0_i32 = arith.constant 0 : i32
    %c0_i32_0 = arith.constant 0 : i32
    return %c0_i32, %arg1 : i32, i32
  }
  func.func @transform_2(%arg0: i32, %arg1: i32) -> (i32, i32) {
    %c0_i32 = arith.constant 0 : i32
    %c0_i32_0 = arith.constant 0 : i32
    return %c0_i32, %arg1 : i32, i32
  }
  func.func @transform_3(%arg0: i32, %arg1: i32) -> (i32, i32) {
    %c0_i32 = arith.constant 0 : i32
    %c0_i32_0 = arith.constant 0 : i32
    return %arg1, %c0_i32 : i32, i32
  }
  func.func @transform_4(%arg0: i32, %arg1: i32) -> (i32, i32) {
    %c0_i32 = arith.constant 0 : i32
    %c0_i32_0 = arith.constant 0 : i32
    %c0_i32_1 = arith.constant 0 : i32
    return %c0_i32, %c0_i32_0 : i32, i32
  }
  func.func @transform_5(%arg0: i32, %arg1: i32) -> (i32, i32) {
    %c0_i32 = arith.constant 0 : i32
    %c0_i32_0 = arith.constant 0 : i32
    return %arg0, %c0_i32 : i32, i32
  }
}

</mosaic_0001>

<bundles_post_ra>
// kernel: wide_mlp_out_fwd.1
= control target key start
LH: loop header
LB: loop body
LE: loop exit
PB: predicated region body
PF: predicated region fallthrough
CT: control target
= control target key end

     0   :  { %10 = vsyncpa [#allocation3], 0  ;;  %s552_s0 = inlined_call_operand.vmem [shape: bf16[8,128], index: 0, kind: input, shape index: {}]   ;;  %s553_s1 = inlined_call_operand.hbm [shape: bf16[128,128], index: 1, kind: input, shape index: {}]   ;;  %s554_s2 = inlined_call_operand.vmem [shape: f32[1,128], index: 2, kind: input, shape index: {}]   ;;  %s555_s3 = inlined_call_operand.hbm [shape: bf16[128,128], index: 3, kind: input, shape index: {}]   ;;  %s556_s4 = inlined_call_operand.vmem [shape: f32[1,128], index: 4, kind: input, shape index: {}]   ;;  %s557_s5 = inlined_call_operand.hbm [shape: f32[8,128], index: 5, kind: output, shape index: {}]  }
   0x1   :  { %11 = vsyncpa [#allocation6], 0 }
   0x2   :  { %12 = vsyncpa [#allocation4], 0  ;;  %s470_s18 = smov [#allocation2]   ;;  %s398_s22 = scalar_lea.hbm %s553_s1, 1024 }
   0x3   :  { %s20_s19 = sshll.u32 %s470_s18, 4  ;;  %p399_p0 = scmp.ne.s32.totalorder %s553_s1, %s398_s22  ;;  %s21_s19 = int_to_ptr.vmem [resolvable:$true] %s20_s19 }
   0x4   :  { %p402_p1 = scmp.lt.u32.totalorder %s398_s22, %s553_s1 }
   0x6   :  { %p404_p2 = pnand %p402_p1, %p399_p0 }
   0x8   :  { %407 = shalt.err (!%p404_p2)
}
   0x9   :  { %s408_s27 = scalar_lea.vmem %s21_s19, 1024  ;;  %p413_p4 = scmp.lt.s32.totalorder %s21_s19, %s21_s19 }
   0xa   :  { %p409_p3 = scmp.ne.s32.totalorder %s21_s19, %s408_s27  ;;  %p414_p5 = scmp.lt.s32.totalorder %s408_s27, %s408_s27 }
   0xc   :  { %p415_p6 = por %p414_p5, %p413_p4 }
   0xe   :  { %p416_p7 = pnand %p415_p6, %p409_p3 }
  0x10   :  { %419 = shalt.err (!%p416_p7)
}
  0x11   :  { %s471_s28 = smov 64   ;;  %s472_s29 = smov 4  }
  0x12   :  { %26 = dma.hbm_to_vmem [thread:$0]  %s553_s1, 1024, %s21_s19, [#allocation3], %s471_s28, %s471_s28, %s472_s29  }
  0x13   :  { %s473_s7 = smov [#allocation5]   ;;  %s420_s11 = scalar_lea.hbm %s555_s3, 1024 }
  0x14   :  { %s34_s8 = sshll.u32 %s473_s7, 4  ;;  %p421_p8 = scmp.ne.s32.totalorder %s555_s3, %s420_s11  ;;  %s35_s8 = int_to_ptr.vmem [resolvable:$true] %s34_s8 }
  0x15   :  { %p424_p9 = scmp.lt.u32.totalorder %s420_s11, %s555_s3 }
  0x17   :  { %p426_p10 = pnand %p424_p9, %p421_p8 }
  0x19   :  { %429 = shalt.err (!%p426_p10)
}
  0x1a   :  { %s430_s16 = scalar_lea.vmem %s35_s8, 1024  ;;  %p435_p12 = scmp.lt.s32.totalorder %s35_s8, %s35_s8 }
  0x1b   :  { %p431_p11 = scmp.ne.s32.totalorder %s35_s8, %s430_s16  ;;  %p436_p13 = scmp.lt.s32.totalorder %s430_s16, %s430_s16 }
  0x1d   :  { %p437_p0 = por %p436_p13, %p435_p12 }
  0x1f   :  { %p438_p1 = pnand %p437_p0, %p431_p11 }
  0x21   :  { %441 = shalt.err (!%p438_p1)
}
  0x22   :  { %40 = dma.hbm_to_vmem [thread:$0]  %s555_s3, 1024, %s35_s8, [#allocation6], %s471_s28, %s471_s28, %s472_s29  }
  0x23   :  { %464 = dma.done.wait [#allocation3], 1024  }
  0x24   :  { %465 = vsyncadd [#allocation3], 4294966272 }
  0x25   :  { %466 = dma.done.wait [#allocation6], 1024  }
  0x26   :  { %467 = vsyncadd [#allocation6], 4294966272  ;;  %v474_v0 = vmov 0.0   ;;  %vm475_vm0 = vmmov 0   ;;  %v382_v1 = vld [vmem:[#allocation2] sm:$0xff]   ;;  %v383_v2 = vld [vmem:[#allocation2 + $0x8] sm:$0xff]  }
  0x27   :  { %335 = vmatprep.subr.bf16.mxu0 %v474_v0  ;;  %351 = vmatprep.mubr.msk.bf16.mxu0 %vm475_vm0, %v474_v0  ;;  %v384_v3 = vld [vmem:[#allocation2 + $0x10] sm:$0xff]   ;;  %v390_v4 = vld [vmem:[#allocation5] sm:$0xff]   ;;  %v385_v5 = vld [vmem:[#allocation2 + $0x18] sm:$0xff]   ;;  %s476_s22 = smov [#allocation7]  }
  0x28   :  { %355 = vmatprep.subr.bf16.mxu1 %v474_v0  ;;  %371 = vmatprep.mubr.msk.bf16.mxu1 %vm475_vm0, %v474_v0  ;;  %v391_v6 = vld [vmem:[#allocation5 + $0x8] sm:$0xff]   ;;  %v386_v7 = vld [vmem:[#allocation2 + $0x20] sm:$0xff]   ;;  %v392_v8 = vld [vmem:[#allocation5 + $0x10] sm:$0xff]   ;;  %s289_s23 = sshll.u32 %s476_s22, 4  ;;  %s290_s23 = int_to_ptr.vmem [resolvable:$true] %s289_s23 }
  0x29   :  { %336 = vmatpush3.bf16.msra.mxu0 %v382_v1  ;;  %356 = vmatpush3.bf16.msra.mxu1 %v390_v4  ;;  %v387_v9 = vld [vmem:[#allocation2 + $0x28] sm:$0xff]   ;;  %v393_v10 = vld [vmem:[#allocation5 + $0x18] sm:$0xff]   ;;  %v388_v11 = vld [vmem:[#allocation2 + $0x30] sm:$0xff]   ;;  %p447_p3 = scmp.lt.s32.totalorder %s290_s23, %s290_s23 }
  0x2a   :  { %337 = vmatprep.subr.bf16.mxu0 %v474_v0  ;;  %357 = vmatprep.subr.bf16.mxu1 %v474_v0  ;;  %v394_v12 = vld [vmem:[#allocation5 + $0x20] sm:$0xff]   ;;  %v389_v13 = vld [vmem:[#allocation2 + $0x38] sm:$0xff]   ;;  %v395_v14 = vld [vmem:[#allocation5 + $0x28] sm:$0xff]  }
  0x2b   :  { %v62_v15 = vld [vmem:[%s552_s0] sm:$0xf]  ;;  %v397_v17 = vld [vmem:[#allocation5 + $0x38] sm:$0xff]  }
  0x2c   :  { %v396_v16 = vld [vmem:[#allocation5 + $0x30] sm:$0xff]  }
  0x2d   :  { %338 = vmatpush3.bf16.msra.mxu0 %v383_v2  ;;  %358 = vmatpush3.bf16.msra.mxu1 %v391_v6  ;;  %v300_v18 = vld [vmem:[%s554_s2] ss:$0 sm:$0xff]  ;;  %s442_s2 = scalar_lea.vmem %s290_s23, 128 }
  0x2e   :  { %339 = vmatprep.subr.bf16.mxu0 %v474_v0  ;;  %359 = vmatprep.subr.bf16.mxu1 %v474_v0  ;;  %v299_v26 = vld [vmem:[%s556_s4] ss:$0 sm:$0xff]  ;;  %p443_p2 = scmp.ne.s32.totalorder %s290_s23, %s442_s2  ;;  %p448_p4 = scmp.lt.s32.totalorder %s442_s2, %s442_s2 }
  0x30   :  { %p449_p5 = por %p448_p4, %p447_p3 }
  0x31   :  { %340 = vmatpush3.bf16.msra.mxu0 %v384_v3  ;;  %360 = vmatpush3.bf16.msra.mxu1 %v392_v8 }
  0x32   :  { %341 = vmatprep.subr.bf16.mxu0 %v474_v0  ;;  %361 = vmatprep.subr.bf16.mxu1 %v474_v0  ;;  %p450_p6 = pnand %p449_p5, %p443_p2 }
  0x35   :  { %342 = vmatpush3.bf16.msra.mxu0 %v385_v5  ;;  %362 = vmatpush3.bf16.msra.mxu1 %v393_v10 }
  0x36   :  { %343 = vmatprep.subr.bf16.mxu0 %v474_v0  ;;  %363 = vmatprep.subr.bf16.mxu1 %v474_v0 }
  0x39   :  { %344 = vmatpush3.bf16.msra.mxu0 %v386_v7  ;;  %364 = vmatpush3.bf16.msra.mxu1 %v394_v12 }
  0x3a   :  { %345 = vmatprep.subr.bf16.mxu0 %v474_v0  ;;  %365 = vmatprep.subr.bf16.mxu1 %v474_v0 }
  0x3d   :  { %346 = vmatpush3.bf16.msra.mxu0 %v387_v9  ;;  %366 = vmatpush3.bf16.msra.mxu1 %v395_v14 }
  0x3e   :  { %347 = vmatprep.subr.bf16.mxu0 %v474_v0  ;;  %367 = vmatprep.subr.bf16.mxu1 %v474_v0 }
  0x41   :  { %348 = vmatpush3.bf16.msra.mxu0 %v388_v11  ;;  %368 = vmatpush3.bf16.msra.mxu1 %v396_v16 }
  0x42   :  { %349 = vmatprep.subr.bf16.mxu0 %v474_v0  ;;  %369 = vmatprep.subr.bf16.mxu1 %v474_v0 }
  0x45   :  { %350 = vmatpush3.bf16.msra.mxu0 %v389_v13  ;;  %370 = vmatpush3.bf16.msra.mxu1 %v397_v17 }
  0x48   :  { %352 = vmatmul.mubr.bf16.vlgmr.msra.gmra.mrb[0].mxu0 %v62_v15 }
 0x11b   :  { %v168_v19 = vpop.f32.mrb[0].mxu0 }
 0x11c   :  { %v169_v20 = vadd.f32 %v300_v18, %v168_v19  ;;  %v353_v21 = vpop.f32.mrb[1].mxu0 }
 0x11d   :  { %v171_v22 = vpop.f32.mrb[2].mxu0 }
 0x11e   :  { %v174_v23 = vmax.f32 %v169_v20, 0.0  ;;  %v354_v24 = vpop.f32.mrb[3].mxu0 }
 0x120   :  { %v176_v25 = vpack.c.bf16 %v174_v23, %v174_v23 }
 0x122   :  { %372 = vmatmul.mubr.bf16.vlgmr.msra.gmra.mrb[0].mxu1 %v176_v25 }
 0x1f5   :  { %v275_v27 = vpop.f32.mrb[0].mxu1 }
 0x1f6   :  { %v281_v28 = vadd.f32 %v299_v26, %v275_v27  ;;  %v373_v29 = vpop.f32.mrb[1].mxu1 }
 0x1f7   :  { %v278_v30 = vpop.f32.mrb[2].mxu1 }
 0x1f8   :  { %282 = vst [vmem:[#allocation7] sm:$0xff] %v281_v28  ;;  %v374_v31 = vpop.f32.mrb[3].mxu1 }
 0x1f9   :  { %453 = shalt.err (!%p450_p6)
}
 0x1fa   :  { %s454_s4 = scalar_lea.hbm %s557_s5, 128 }
 0x1fb   :  { %p455_p7 = scmp.ne.s32.totalorder %s557_s5, %s454_s4  ;;  %p458_p8 = scmp.lt.u32.totalorder %s454_s4, %s557_s5 }
 0x1fd   :  { %p460_p9 = pnand %p458_p8, %p455_p7 }
 0x1ff   :  { %463 = shalt.err (!%p460_p9)
}
 0x200   :  { %292 = dma.vmem_to_hbm [thread:$0]  %s290_s23, 128, %s557_s5, [#allocation4]  }
 0x201   :  { %468 = dma.done.wait [#allocation4], 128  }
 0x202   :  { %469 = vsyncadd [#allocation4], 4294967168 }
 0x203   :  { %296 = vsyncpa [#allocation3], 1 }
 0x204   :  { %297 = vsyncpa [#allocation6], 1 }
 0x205   :  { %298 = vsyncpa [#allocation4], 1 }

</bundles_post_ra>
